<compile_context>
chip_gen: v5e
topology: v5e:2x2
jax: 0.10.0
libtpu: 0.0.40
codegen_flags: <defaults>
</compile_context>

<pallas_src>
import functools

import jax
import jax.numpy as jnp
from jax.experimental import pallas as pl
from jax.experimental.pallas import tpu as pltpu


def _round_up(x, m):
    return ((x + m - 1) // m) * m


def _pick_tile():
    # v5e/v6e: 128 MiB VMEM per core -> 2048-wide adjacency tiles.
    # v7x:      64 MiB               -> 1024-wide tiles (still only ~5 MiB).
    try:
        vmem_bytes = pltpu.get_tpu_info().vmem_capacity_bytes
    except Exception:
        return 1024
    return 2048 if vmem_bytes > (64 << 20) else 1024


# --------------------------------------------------------------------------
# Stage 1: h = X @ W + b (padded rows zeroed) and fused projections
#          f = h @ [a1 | a2]
# --------------------------------------------------------------------------
def _proj_kernel(x_ref, w_ref, b_ref, a_ref, h_ref, f_ref, *, n_valid, tile):
    i = pl.program_id(0)
    h = jnp.dot(x_ref[...], w_ref[...], preferred_element_type=jnp.float32)
    h = h + b_ref[...]
    # Zero the padded node rows.  REQUIRED invariant for stage 2: the raw
    # (unpadded) int8 adjacency is streamed with ragged boundary tiles, and
    # their garbage lanes must hit all-zero h rows to contribute nothing.
    row = i * tile + jax.lax.broadcasted_iota(jnp.int32, h.shape, 0)
    h = jnp.where(row < n_valid, h, 0.0)
    # f[:, 0] = h @ a1, f[:, 1] = h @ a2 in a single narrow matmul.
    f_ref[...] = jnp.dot(h, a_ref[...], preferred_element_type=jnp.float32)
    # h streamed to the spmm stage in bf16 (MXU-native, halves its HBM bytes).
    h_ref[...] = h.astype(jnp.bfloat16)


# --------------------------------------------------------------------------
# Stage 2: tiled masked spmm  out[i] = sum_j (adj[i,j] * leaky(f1[i]+f2[j])) h[j]
#          Output block (index (i, 0)) is VMEM-resident across the j axis.
# --------------------------------------------------------------------------
def _spmm_kernel(adj_ref, h_ref, f1_ref, f2_ref, out_ref, *, alpha):
    j = pl.program_id(1)

    @pl.when(j == 0)
    def _init():
        out_ref[...] = jnp.zeros_like(out_ref)

    # scores s[r, c] = f1[r] + f2[c]; keep the O(tile^2) VPU path lean.
    s = f1_ref[...] + f2_ref[...]                  # (ti,1)+(1,tj) -> (ti,tj) f32
    if 0.0 <= alpha <= 1.0:
        leaky = jnp.maximum(s, alpha * s)          # mul+max (== LeakyReLU here)
    else:                                          # static fallback
        leaky = jnp.where(s > 0, s, alpha * s)
    # int8 0/1 mask -> bf16 convert, multiply in bf16 (exact for 0/1 values).
    atten = adj_ref[...].astype(jnp.bfloat16) * leaky.astype(jnp.bfloat16)
    out_ref[...] += jnp.dot(atten, h_ref[...], preferred_element_type=jnp.float32)


# --------------------------------------------------------------------------
# Empty-edge path: PyTorch returns X @ W + b when the sparse adj has no edges.
# --------------------------------------------------------------------------
def _linear_kernel(x_ref, w_ref, b_ref, out_ref):
    h = jnp.dot(x_ref[...], w_ref[...], preferred_element_type=jnp.float32)
    out_ref[...] = (h + b_ref[...]).astype(out_ref.dtype)


def graph_attention_conv(features, adj_mask, weight, bias, a, alpha=0.2,
                         *, has_edges=True, tile_n=None):
    """features: (N, F_in); adj_mask: (N, N) 0/1 edge mask -- supply it as int8
    so it is streamed untouched (no O(N^2) pad/cast pass is made here);
    weight: (F_in, F_out); bias: (F_out,); a: (2*F_out, 1).
    has_edges: static flag replacing the PyTorch `adj_idx.numel()` branch."""
    n, f_in = features.shape
    f_out = weight.shape[1]

    tile = tile_n if tile_n is not None else _pick_tile()
    tile = max(128, min(tile, _round_up(n, 128)))
    assert tile % 128 == 0, "tile_n must be a multiple of 128"
    n_p = _round_up(n, tile)          # padded node axis (X/h/f/out only: O(N*F) bytes)
    f_p = _round_up(f_out, 128)       # lane-dense feature axis (128 for small F_out)
    grid_rows = n_p // tile

    x_p = jnp.pad(features.astype(jnp.float32), ((0, n_p - n), (0, 0)))
    w_p = jnp.pad(weight.astype(jnp.float32), ((0, 0), (0, f_p - f_out)))
    b_p = jnp.pad(bias.astype(jnp.float32), (0, f_p - f_out)).reshape(1, f_p)

    if not has_edges:
        out = pl.pallas_call(
            _linear_kernel,
            out_shape=jax.ShapeDtypeStruct((n_p, f_p), jnp.float32),
            grid=(grid_rows,),
            in_specs=[
                pl.BlockSpec((tile, f_in), lambda i: (i, 0)),
                pl.BlockSpec((f_in, f_p), lambda i: (0, 0)),
                pl.BlockSpec((1, f_p), lambda i: (0, 0)),
            ],
            out_specs=pl.BlockSpec((tile, f_p), lambda i: (i, 0)),
            compiler_params=pltpu.CompilerParams(
                dimension_semantics=("parallel",)),
        )(x_p, w_p, b_p)
        return out[:n, :f_out]

    # Producers should hand the mask over as int8; this is a no-op then.
    if adj_mask.dtype != jnp.int8:
        adj_mask = adj_mask.astype(jnp.int8)

    # Fused projection RHS [a1 | a2], zero-padded along the feature axis.
    a_fused = jnp.concatenate([a[:f_out, :], a[f_out:, :]], axis=1).astype(jnp.float32)
    a_p = jnp.pad(a_fused, ((0, f_p - f_out), (0, 0)))            # (f_p, 2)

    # ---- stage 1: h (bf16, padded rows zeroed) and projections f (f32) -----
    h_bf16, f = pl.pallas_call(
        functools.partial(_proj_kernel, n_valid=n, tile=tile),
        out_shape=(jax.ShapeDtypeStruct((n_p, f_p), jnp.bfloat16),
                   jax.ShapeDtypeStruct((n_p, 2), jnp.float32)),
        grid=(grid_rows,),
        in_specs=[
            pl.BlockSpec((tile, f_in), lambda i: (i, 0)),   # X row block
            pl.BlockSpec((f_in, f_p), lambda i: (0, 0)),    # W (padded)
            pl.BlockSpec((1, f_p), lambda i: (0, 0)),       # bias row
            pl.BlockSpec((f_p, 2), lambda i: (0, 0)),       # [a1 | a2]
        ],
        out_specs=(pl.BlockSpec((tile, f_p), lambda i: (i, 0)),
                   pl.BlockSpec((tile, 2), lambda i: (i, 0))),
        compiler_params=pltpu.CompilerParams(
            dimension_semantics=("parallel",)),
    )(x_p, w_p, b_p, a_p)

    f1 = f[:, 0:1]                        # (n_p, 1) column   (O(N) bytes)
    f2_row = f[:, 1:2].reshape(1, n_p)    # (1, n_p) lane-dense row

    # ---- stage 2: tiled masked spmm, output resident across j --------------
    # The int8 adjacency is left at its original (N, N) shape; boundary tiles
    # are ragged and their garbage lanes are neutralized by the zeroed h rows.
    vmem_limit = (64 if tile >= 2048 else 32) * 1024 * 1024
    out = pl.pallas_call(
        functools.partial(_spmm_kernel, alpha=float(alpha)),
        out_shape=jax.ShapeDtypeStruct((n_p, f_p), jnp.float32),
        grid=(grid_rows, grid_rows),
        in_specs=[
            pl.BlockSpec((tile, tile), lambda i, j: (i, j)),  # adj tile (int8)
            pl.BlockSpec((tile, f_p), lambda i, j: (j, 0)),   # h[j] tile (bf16)
            pl.BlockSpec((tile, 1), lambda i, j: (i, 0)),     # f1[i] column
            pl.BlockSpec((1, tile), lambda i, j: (0, j)),     # f2[j] row
        ],
        out_specs=pl.BlockSpec((tile, f_p), lambda i, j: (i, 0)),
        compiler_params=pltpu.CompilerParams(
            dimension_semantics=("parallel", "arbitrary"),
            vmem_limit_bytes=vmem_limit),
    )(adj_mask, h_bf16, f1, f2_row)

    return out[:n, :f_out]


def _reference(features, adj_mask_f32, weight, bias, a, alpha):
    f_out = weight.shape[1]
    h = features @ weight + bias
    f1 = h @ a[:f_out, :]
    f2 = h @ a[f_out:, :]
    s = f1 + f2.T
    e = jnp.where(s > 0, s, alpha * s)
    return (e * adj_mask_f32) @ h


if __name__ == "__main__":
    N, F_IN, F_OUT = 200, 48, 24     # exercises ragged adj tiles + (2,2) spmm grid
    ALPHA = 0.2

    key = jax.random.PRNGKey(0)
    k_w, k_a, k_x, k_adj = jax.random.split(key, 4)

    # Deterministic parameter init matching the module's __init__ (init='xavier'):
    #   weight -> xavier_normal(gain=0.02), bias -> 0, a -> xavier_normal(gain=sqrt(2))
    w_std = 0.02 * (2.0 / (F_IN + F_OUT)) ** 0.5
    a_std = (2.0 ** 0.5) * (2.0 / (2 * F_OUT + 1)) ** 0.5
    weight = (w_std * jax.random.normal(k_w, (F_IN, F_OUT))).astype(jnp.float32)
    a = (a_std * jax.random.normal(k_a, (2 * F_OUT, 1))).astype(jnp.float32)
    bias = jnp.zeros((F_OUT,), jnp.float32)

    features = jax.random.normal(k_x, (N, F_IN)).astype(jnp.float32)
    adj_mask = jax.random.bernoulli(k_adj, 0.3, (N, N)).astype(jnp.int8)  # 0/1 edges

    ref = _reference(features, adj_mask.astype(jnp.float32), weight, bias, a, ALPHA)

    # Multi-tile grid (2x2) with ragged adjacency boundary tiles.
    out = graph_attention_conv(features, adj_mask, weight, bias, a, ALPHA, tile_n=128)
    out = jax.block_until_ready(out)
    assert out.shape == (N, F_OUT) and out.dtype == jnp.float32
    # bf16 MXU operands (atten, h) with f32 accumulation -> loosened tolerance.
    assert jnp.allclose(out, ref, atol=2e-3, rtol=2e-2), "mismatch (tile=128)"

    # Auto-picked tile (clamped to 256 at this N): single ragged block path.
    out_auto = jax.block_until_ready(
        graph_attention_conv(features, adj_mask, weight, bias, a, ALPHA))
    assert jnp.allclose(out_auto, ref, atol=2e-3, rtol=2e-2), "mismatch (auto tile)"

    # Empty-edge branch (PyTorch returns X @ W + b when adj has no indices).
    out_lin = jax.block_until_ready(
        graph_attention_conv(features, adj_mask, weight, bias, a, ALPHA,
                             has_edges=False, tile_n=128))
    assert jnp.allclose(out_lin, features @ weight + bias, atol=1e-5, rtol=1e-5)

    print("KERNEL_OK")
</pallas_src>

<mosaic_0001>
module attributes {stable_mosaic.version = 11 : i64} {
  func.func @_proj_kernel(%arg0: i32, %arg1: memref<128x48xf32, #tpu.memory_space<vmem>>, %arg2: memref<48x128xf32, #tpu.memory_space<vmem>>, %arg3: memref<1x128xf32, #tpu.memory_space<vmem>>, %arg4: memref<128x2xf32, #tpu.memory_space<vmem>>, %arg5: memref<128x128xbf16, #tpu.memory_space<vmem>>, %arg6: memref<128x2xf32, #tpu.memory_space<vmem>>) attributes {dimension_semantics = [#tpu.dimension_semantics<parallel>], iteration_bounds = array<i64: 2>, scalar_prefetch = 0 : i64, scratch_operands = 0 : i64, tpu.core_type = #tpu.core_type<tc>, window_params = [{transform_indices = @transform_0, window_bounds = array<i64: 128, 48>}, {pipeline_mode = #tpu.pipeline_mode<synchronous>, transform_indices = @transform_1, window_bounds = array<i64: 48, 128>}, {pipeline_mode = #tpu.pipeline_mode<synchronous>, transform_indices = @transform_2, window_bounds = array<i64: 1, 128>}, {pipeline_mode = #tpu.pipeline_mode<synchronous>, transform_indices = @transform_3, window_bounds = array<i64: 128, 2>}, {transform_indices = @transform_4, window_bounds = array<i64: 128, 128>}, {transform_indices = @transform_5, window_bounds = array<i64: 128, 2>}]} {
    %c0 = arith.constant 0 : index
    %c0_0 = arith.constant 0 : index
    %0 = vector.load %arg1[%c0, %c0_0] : memref<128x48xf32, #tpu.memory_space<vmem>>, vector<128x48xf32>
    %c0_1 = arith.constant 0 : index
    %c0_2 = arith.constant 0 : index
    %1 = vector.load %arg2[%c0_1, %c0_2] : memref<48x128xf32, #tpu.memory_space<vmem>>, vector<48x128xf32>
    %cst = arith.constant dense<0.000000e+00> : vector<128x128xf32>
    %2 = tpu.matmul %0, %1, %cst {dimension_numbers = #tpu.dot_dimension_numbers<[1], [0], [0], [1], [0, 0, 1, 1], [], []>} : vector<128x48xf32>, vector<48x128xf32>, vector<128x128xf32> -> vector<128x128xf32>
    %c0_3 = arith.constant 0 : index
    %c0_4 = arith.constant 0 : index
    %3 = vector.load %arg3[%c0_3, %c0_4] : memref<1x128xf32, #tpu.memory_space<vmem>>, vector<1x128xf32>
    %4 = vector.broadcast %3 : vector<1x128xf32> to vector<128x128xf32>
    %5 = arith.addf %2, %4 : vector<128x128xf32>
    %c128_i32 = arith.constant 128 : i32
    %6 = arith.muli %arg0, %c128_i32 : i32
    %7 = tpu.iota {dimensions = array<i32: 0>} : vector<128x128xi32>
    %8 = vector.broadcast %6 : i32 to vector<128x128xi32>
    %9 = arith.addi %8, %7 : vector<128x128xi32>
    %c200_i32 = arith.constant 200 : i32
    %10 = vector.broadcast %c200_i32 : i32 to vector<128x128xi32>
    %11 = arith.cmpi slt, %9, %10 : vector<128x128xi32>
    %cst_5 = arith.constant 0.000000e+00 : f32
    %12 = vector.broadcast %cst_5 : f32 to vector<128x128xf32>
    %13 = arith.select %11, %5, %12 : vector<128x128xi1>, vector<128x128xf32>
    %c0_6 = arith.constant 0 : index
    %c0_7 = arith.constant 0 : index
    %14 = vector.load %arg4[%c0_6, %c0_7] : memref<128x2xf32, #tpu.memory_space<vmem>>, vector<128x2xf32>
    %cst_8 = arith.constant dense<0.000000e+00> : vector<128x2xf32>
    %15 = tpu.matmul %13, %14, %cst_8 {dimension_numbers = #tpu.dot_dimension_numbers<[1], [0], [0], [1], [0, 0, 1, 1], [], []>} : vector<128x128xf32>, vector<128x2xf32>, vector<128x2xf32> -> vector<128x2xf32>
    %c0_9 = arith.constant 0 : index
    %c0_10 = arith.constant 0 : index
    %16 = vector.load %arg6[%c0_9, %c0_10] : memref<128x2xf32, #tpu.memory_space<vmem>>, vector<128x2xf32>
    tpu.vector_store %arg6[%c0_9, %c0_10], %15 {strides = array<i32>} : memref<128x2xf32, #tpu.memory_space<vmem>>, vector<128x2xf32>,
    %17 = arith.truncf %13 : vector<128x128xf32> to vector<128x128xbf16>
    %c0_11 = arith.constant 0 : index
    %c0_12 = arith.constant 0 : index
    %18 = vector.load %arg5[%c0_11, %c0_12] : memref<128x128xbf16, #tpu.memory_space<vmem>>, vector<128x128xbf16>
    tpu.vector_store %arg5[%c0_11, %c0_12], %17 {strides = array<i32>} : memref<128x128xbf16, #tpu.memory_space<vmem>>, vector<128x128xbf16>,
    return
  }
  func.func @transform_0(%arg0: i32) -> (i32, i32) {
    %c0_i32 = arith.constant 0 : i32
    %c0_i32_0 = arith.constant 0 : i32
    return %arg0, %c0_i32 : i32, i32
  }
  func.func @transform_1(%arg0: i32) -> (i32, i32) {
    %c0_i32 = arith.constant 0 : i32
    %c0_i32_0 = arith.constant 0 : i32
    %c0_i32_1 = arith.constant 0 : i32
    return %c0_i32, %c0_i32_0 : i32, i32
  }
  func.func @transform_2(%arg0: i32) -> (i32, i32) {
    %c0_i32 = arith.constant 0 : i32
    %c0_i32_0 = arith.constant 0 : i32
    %c0_i32_1 = arith.constant 0 : i32
    return %c0_i32, %c0_i32_0 : i32, i32
  }
  func.func @transform_3(%arg0: i32) -> (i32, i32) {
    %c0_i32 = arith.constant 0 : i32
    %c0_i32_0 = arith.constant 0 : i32
    %c0_i32_1 = arith.constant 0 : i32
    return %c0_i32, %c0_i32_0 : i32, i32
  }
  func.func @transform_4(%arg0: i32) -> (i32, i32) {
    %c0_i32 = arith.constant 0 : i32
    %c0_i32_0 = arith.constant 0 : i32
    return %arg0, %c0_i32 : i32, i32
  }
  func.func @transform_5(%arg0: i32) -> (i32, i32) {
    %c0_i32 = arith.constant 0 : i32
    %c0_i32_0 = arith.constant 0 : i32
    return %arg0, %c0_i32 : i32, i32
  }
}

</mosaic_0001>

<bundles_post_ra>
// kernel: tpu_custom_call.1
= control target key start
LH: loop header
LB: loop body
LE: loop exit
PB: predicated region body
PF: predicated region fallthrough
CT: control target
= control target key end

     0   :  { %11 = vsyncpa [#allocation3], 0  ;;  %s1295_s0 = inlined_call_operand.vmem [shape: f32[256,48], index: 0, kind: input, shape index: {}]   ;;  %s1296_s1 = inlined_call_operand.vmem [shape: f32[48,128], index: 1, kind: input, shape index: {}]   ;;  %s1297_s2 = inlined_call_operand.vmem [shape: f32[1,128], index: 2, kind: input, shape index: {}]   ;;  %s1298_s3 = inlined_call_operand.vmem [shape: f32[128,2], index: 3, kind: input, shape index: {}]   ;;  %s1299_s4 = inlined_call_operand.hbm [shape: bf16[256,128], index: 4, kind: output, shape index: {0}]   ;;  %s1300_s5 = inlined_call_operand.vmem [shape: f32[256,2], index: 5, kind: output, shape index: {1}]  }
   0x1   :  { %13 = vsyncpa [#allocation3 + $0x1], 0  ;;  %s960_s18 = smov 0   ;;  %s962_s19 = smov 0  }
   0x2   :  { %s964_s20 = smov 0   ;;  %s966_s21 = smov 0  }
   0x3 LB: > { %s981_s22 = sadd.s32 4294967295, %s926_s21   ;;  %s689_s23 = sadd.s32 4294967294, %s926_s21   ;;  %s926_s21 = sphi %s966_s21, %s1306_s21   ;;  %s922_s20 = sphi %s964_s20, %s1305_s20   ;;  %s918_s19 = sphi %s962_s19, %s1304_s19   ;;  %s914_s18 = sphi %s960_s18, %s1303_s18  }
   0x4   : > { %s985_s24 = sadd.s32 1, %s926_s21   ;;  %s115_s25 = sadd.s32 1, %s922_s20 }
   0x5   : > { %s112_s26 = ssub.s32 %s926_s21, %s985_s24  ;;  %p125_p0 = scmp.ne.s32.totalorder %s922_s20, %s918_s19 }
   0x6   : > { %p113_p1 = scmp.eq.s32.totalorder %s112_s26, 0  ;;  %p126_p2 = scmp.eq.s32.totalorder %s981_s22, 1 }
   0x7   : > { %p131_p3 = scmp.ne.s32.totalorder %s918_s19, %s914_s18  ;;  %p132_p4 = scmp.eq.s32.totalorder %s689_s23, 1 }
   0x8   : > { %s996_s27 = scalar_select %p113_p1, %s922_s20, %s115_s25  }
   0x9   : > { %p998_p5 = por %p126_p2, %p125_p0  ;;  %p1002_p6 = por %p132_p4, %p131_p3 }
   0xa   : > { %p692_p7 = scmp.ge.s32.totalorder %s926_s21, 1  ;;  %p194_p8 = scmp.lt.s32.totalorder %s926_s21, 3 }
   0xc   : > { %p195_p9 = pnand %p692_p7, %p194_p8 }
   0xd   : > { %s694_s9 = sshll.u32 (!%p195_p9), %s981_s22, 4  ;;  %s217_s16 = sand.u32 (!%p195_p9), 1, %s918_s19  }
   0xe   : > { %198 = sbr.rel (%p195_p9) target bundleno = 396 (0x18c), region = 36  ;;  %p228_p10 = scmp.lt.s32.totalorder (!%p195_p9), %s694_s9, 31 }
   0xf   : > { %s693_s17 = sshll.u32 (!%p195_p9), %s217_s16, 6  ;;  %s736_s26 = sshll.u32 (!%p195_p9), %s981_s22, 6 }
  0x10   : > { %s1138_s23 = scalar_lea.vmem (!%p195_p9), [#allocation2], %s693_s17  ;;  %s594_s7 = scalar_lea.hbm (!%p195_p9), %s1299_s4, %s736_s26 }
  0x11   : > { %s595_s8 = sshll.u32 (!%p195_p9), %s1138_s23, 4  ;;  %s597_s10 = sshll.u32 (!%p195_p9), %s594_s7, 4  ;;  %s596_s8 = int_to_ptr.vmem [resolvable:$true] %s595_s8  ;;  %s598_s10 = int_to_ptr.hbm [resolvable:$true] %s597_s10 }
  0x12   : > { %s578_s11 = scalar_lea.sflag (!%p195_p9), [#allocation3], %s217_s16  ;;  %s878_s12 = sshra.s32 (!%p195_p9), %s598_s10, 4  ;;  %s879_s12 = int_to_ptr.hbm [resolvable:$true] %s878_s12 }
  0x13   : > { %v261_v0 = vld [vmem:[%s1296_s1 + $0x28] sm:$0xff]  ;;  %v260_v1 = vld [vmem:[%s1296_s1 + $0x20] sm:$0xff]  ;;  %v259_v2 = vld [vmem:[%s1296_s1 + $0x18] sm:$0xff]  ;;  %s1308_s9 = smov (!%p228_p10, %s694_s9), 31  ;;  %vm266_vm0 = vcmask 392192   ;;  %v381_v38 = vlaneseq  ;;  %p885_p0 = scmp.lt.s32.totalorder %s879_s12, %s1299_s4 }
  0x14   : > { %325 = vmatpush.msra.mxu0 %v261_v0  ;;  %784 = vmatpush.msra.mxu3 %v261_v0  ;;  %v258_v3 = vld [vmem:[%s1296_s1 + $0x10] sm:$0xff]  ;;  %s695_s14 = sshll.u32 %s1308_s9, 3  ;;  %v257_v4 = vld [vmem:[%s1296_s1 + $0x8] sm:$0xff]  ;;  %v256_v5 = vld [vmem:[%s1296_s1] sm:$0xff] }
  0x15   : > { %s1032_s25 = scalar_lea.vmem %s1295_s0, %s695_s14  ;;  %v462_v16 = vld [vmem:[%s1298_s3 + $0x78] sm:$0xff]  ;;  %v461_v17 = vld [vmem:[%s1298_s3 + $0x70] sm:$0xff]  ;;  %v460_v18 = vld [vmem:[%s1298_s3 + $0x68] sm:$0xff]  ;;  %v1118_v39 = vshrl.u32 %v381_v38, 7 }
  0x16   : > { %326 = vmatpush.msra.mxu0 %v260_v1  ;;  %785 = vmatpush.msra.mxu3 %v260_v1  ;;  %v240_v6 = vld [vmem:[%s1032_s25] sm:$0xff]  ;;  %v241_v7 = vld [vmem:[%s1032_s25 + $0x8] sm:$0xff]  ;;  %v242_v8 = vld [vmem:[%s1032_s25 + $0x10] sm:$0xff] }
  0x17   : > { %v250_v9 = vld [vmem:[%s1032_s25 + $0x50] sm:$0xff]  ;;  %v243_v10 = vld [vmem:[%s1032_s25 + $0x18] sm:$0xff]  ;;  %v244_v12 = vld [vmem:[%s1032_s25 + $0x20] sm:$0xff]  ;;  %463 = vmatpush.msra.mxu1 %v462_v16  ;;  %790 = vmatpush.msra.mxu2 %v462_v16  ;;  %v383_v44 = vadd.s32 8, %v1118_v39  ;;  %v384_v48 = vadd.s32 16, %v1118_v39  ;;  %v385_v55 = vadd.s32 24, %v1118_v39 }
  0x18   : > { %327 = vmatpush.msra.mxu0 %v259_v2  ;;  %786 = vmatpush.msra.mxu3 %v259_v2  ;;  %v251_v11 = vld [vmem:[%s1032_s25 + $0x58] sm:$0xff]  ;;  %v252_v13 = vld [vmem:[%s1032_s25 + $0x60] sm:$0xff]  ;;  %v245_v14 = vld [vmem:[%s1032_s25 + $0x28] sm:$0xff]  ;;  %v386_v59 = vadd.s32 32, %v1118_v39  ;;  %v392_v2 = vadd.s32 80, %v1118_v39 }
  0x19   : > { %v253_v15 = vld [vmem:[%s1032_s25 + $0x68] sm:$0xff]  ;;  %464 = vmatpush.msra.mxu1 %v461_v17  ;;  %792 = vmatpush.msra.mxu2 %v461_v17  ;;  %v246_v19 = vld [vmem:[%s1032_s25 + $0x30] sm:$0xff]  ;;  %v459_v20 = vld [vmem:[%s1298_s3 + $0x60] sm:$0xff] }
  0x1a   : > { %328 = vmatpush.msra.mxu0 %v258_v3  ;;  %787 = vmatpush.msra.mxu3 %v258_v3  ;;  %v254_v21 = vld [vmem:[%s1032_s25 + $0x70] sm:$0xff]  ;;  %v458_v22 = vld [vmem:[%s1298_s3 + $0x58] sm:$0xff]  ;;  %v456_v24 = vld [vmem:[%s1298_s3 + $0x48] sm:$0xff]  ;;  %v393_v3 = vadd.s32 88, %v1118_v39 }
  0x1b   : > { %465 = vmatpush.msra.mxu1 %v460_v18  ;;  %794 = vmatpush.msra.mxu2 %v460_v18  ;;  %v457_v23 = vld [vmem:[%s1298_s3 + $0x50] sm:$0xff]  ;;  %v247_v25 = vld [vmem:[%s1032_s25 + $0x38] sm:$0xff]  ;;  %v455_v26 = vld [vmem:[%s1298_s3 + $0x40] sm:$0xff] }
  0x1c   : > { %329 = vmatpush.msra.mxu0 %v257_v4  ;;  %788 = vmatpush.msra.mxu3 %v257_v4  ;;  %v255_v27 = vld [vmem:[%s1032_s25 + $0x78] sm:$0xff]  ;;  %v453_v29 = vld [vmem:[%s1298_s3 + $0x30] sm:$0xff]  ;;  %v452_v30 = vld [vmem:[%s1298_s3 + $0x28] sm:$0xff] }
  0x1d   : > { %466 = vmatpush.msra.mxu1 %v459_v20  ;;  %796 = vmatpush.msra.mxu2 %v459_v20  ;;  %v454_v28 = vld [vmem:[%s1298_s3 + $0x38] sm:$0xff]  ;;  %v248_v31 = vld [vmem:[%s1032_s25 + $0x40] sm:$0xff]  ;;  %v449_v34 = vld [vmem:[%s1298_s3 + $0x10] sm:$0xff] }
  0x1e   : > { %330 = vmatpush.msra.mxu0 %v256_v5  ;;  %789 = vmatpush.msra.mxu3 %v256_v5  ;;  %v451_v32 = vld [vmem:[%s1298_s3 + $0x20] sm:$0xff]  ;;  %v450_v33 = vld [vmem:[%s1298_s3 + $0x18] sm:$0xff]  ;;  %v249_v35 = vld [vmem:[%s1032_s25 + $0x48] sm:$0xff]  ;;  %s714_s25 = sshll.u32 %s981_s22, 7  ;;  %s884_s22 = scalar_lea.hbm %s1299_s4, 128 }
  0x1f   : > { %698 = vmatmul.msk.f32.vlgmr.msra.gmra.mxu0 %vm266_vm0, %v240_v6  ;;  %708 = vmatmul.msk.f32.vlgmr.msra.gmra.mxu3 %vm266_vm0, %v250_v9  ;;  %v448_v36 = vld [vmem:[%s1298_s3 + $0x8] sm:$0xff]  ;;  %v447_v37 = vld [vmem:[%s1298_s3] sm:$0xff]  ;;  %v1120_v40 = vstv %s714_s25  ;;  %v387_v6 = vadd.s32 40, %v1118_v39  ;;  %s880_s25 = scalar_lea.hbm %s879_s12, 64 }
  0x20   : > { %791 = vmatpush.msrb.mxu3 %v462_v16  ;;  %467 = vmatpush.msra.mxu1 %v458_v22  ;;  %v399_v41 = vadd.s32 %v1120_v40, %v1118_v39  ;;  %v1127_v42 = vld [vmem:[%s1297_s2] ss:$0 sm:$0xff]  ;;  %v400_v46 = vadd.s32 %v1120_v40, %v383_v44  ;;  %v401_v53 = vadd.s32 %v1120_v40, %v384_v48  ;;  %v390_v44 = vadd.s32 64, %v1118_v39  ;;  %p881_p11 = scmp.ne.s32.totalorder %s879_s12, %s880_s25  ;;  %p886_p1 = scmp.lt.s32.totalorder %s884_s22, %s880_s25 }
  0x21   : > { %798 = vmatpush.msra.mxu2 %v458_v22  ;;  %v402_v57 = vadd.s32 %v1120_v40, %v385_v55  ;;  %v403_v1 = vadd.s32 %v1120_v40, %v386_v59  ;;  %v1158_v9 = vadd.s32 %v1120_v40, %v393_v3 }
  0x22   : > { %793 = vmatpush.msrb.mxu3 %v461_v17  ;;  %468 = vmatpush.msra.mxu1 %v457_v23  ;;  %vm415_vm1 = vcmp.lt.s32.totalorder %v399_v41, 200  ;;  %vm416_vm2 = vcmp.lt.s32.totalorder %v400_v46, 200  ;;  %vm417_vm3 = vcmp.lt.s32.totalorder %v401_v53, 200  ;;  %v388_v17 = vadd.s32 48, %v1118_v39  ;;  %p882_p12 = pnand %p881_p11, %p998_p5  ;;  %p887_p2 = por %p886_p1, %p885_p0 }
  0x23   : > { %800 = vmatpush.msra.mxu2 %v457_v23  ;;  %vm418_vm4 = vcmp.lt.s32.totalorder %v402_v57, 200  ;;  %vm419_vm5 = vcmp.lt.s32.totalorder %v403_v1, 200  ;;  %vm426_vm7 = vcmp.lt.s32.totalorder %v1158_v9, 200 }
  0x24   : > { %795 = vmatpush.msrb.mxu3 %v460_v18  ;;  %469 = vmatpush.msra.mxu1 %v456_v24  ;;  %p883_p13 = pneg %p882_p12 }
  0x25   : > { %802 = vmatpush.msra.mxu2 %v456_v24 }
  0x26   : > { %797 = vmatpush.msrb.mxu3 %v459_v20  ;;  %470 = vmatpush.msra.mxu1 %v455_v26  ;;  %p888_p3 = pnand %p887_p2, %p883_p13 }
  0x27   : > { %699 = vmatmul.msk.f32.gmra.mxu0 %vm266_vm0, %v241_v7  ;;  %709 = vmatmul.msk.f32.gmra.mxu3 %vm266_vm0, %v251_v11 }
  0x28   : > { %799 = vmatpush.msrb.mxu3 %v458_v22  ;;  %804 = vmatpush.msra.mxu2 %v455_v26 }
  0x29   : > { %471 = vmatpush.msra.mxu1 %v454_v28 }
  0x2a   : > { %801 = vmatpush.msrb.mxu3 %v457_v23  ;;  %806 = vmatpush.msra.mxu2 %v454_v28  ;;  %v405_v23 = vadd.s32 %v1120_v40, %v388_v17 }
  0x2b   : > { %472 = vmatpush.msra.mxu1 %v453_v29 }
  0x2c   : > { %803 = vmatpush.msrb.mxu3 %v456_v24  ;;  %808 = vmatpush.msra.mxu2 %v453_v29  ;;  %v394_v24 = vadd.s32 96, %v1118_v39  ;;  %vm421_vm9 = vcmp.lt.s32.totalorder %v405_v23, 200 }
  0x2d   : > { %473 = vmatpush.msra.mxu1 %v452_v30 }
  0x2e   : > { %805 = vmatpush.msrb.mxu3 %v455_v26  ;;  %810 = vmatpush.msra.mxu2 %v452_v30 }
  0x2f   : > { %700 = vmatmul.msk.f32.gmra.mxu0 %vm266_vm0, %v242_v8  ;;  %710 = vmatmul.msk.f32.gmra.mxu3 %vm266_vm0, %v252_v13  ;;  %v1155_v8 = vadd.s32 %v1120_v40, %v392_v2 }
  0x30   : > { %807 = vmatpush.msrb.mxu3 %v454_v28  ;;  %474 = vmatpush.msra.mxu1 %v451_v32  ;;  %v389_v28 = vadd.s32 56, %v1118_v39 }
  0x31   : > { %812 = vmatpush.msra.mxu2 %v451_v32  ;;  %vm425_vm6 = vcmp.lt.s32.totalorder %v1155_v8, 200 }
  0x32   : > { %809 = vmatpush.msrb.mxu3 %v453_v29  ;;  %475 = vmatpush.msra.mxu1 %v450_v33 }
  0x33   : > { %814 = vmatpush.msra.mxu2 %v450_v33 }
  0x34   : > { %811 = vmatpush.msrb.mxu3 %v452_v30  ;;  %476 = vmatpush.msra.mxu1 %v449_v34  ;;  %v411_v30 = vadd.s32 %v1120_v40, %v394_v24 }
  0x35   : > { %816 = vmatpush.msra.mxu2 %v449_v34 }
  0x36   : > { %813 = vmatpush.msrb.mxu3 %v451_v32  ;;  %477 = vmatpush.msra.mxu1 %v448_v36  ;;  %vm427_vm10 = vcmp.lt.s32.totalorder %v411_v30, 200 }
  0x37   : > { %701 = vmatmul.msk.f32.gmra.mxu0 %vm266_vm0, %v243_v10  ;;  %711 = vmatmul.msk.f32.gmra.mxu3 %vm266_vm0, %v253_v15 }
  0x38   : > { %815 = vmatpush.msrb.mxu3 %v450_v33  ;;  %818 = vmatpush.msra.mxu2 %v448_v36 }
  0x39   : > { %478 = vmatpush.msra.mxu1 %v447_v37 }
  0x3a   : > { %817 = vmatpush.msrb.mxu3 %v449_v34  ;;  %820 = vmatpush.msra.mxu2 %v447_v37  ;;  %v396_v34 = vadd.s32 112, %v1118_v39 }
  0x3c   : > { %819 = vmatpush.msrb.mxu3 %v448_v36  ;;  %v413_v41 = vadd.s32 %v1120_v40, %v396_v34 }
  0x3e   : > { %821 = vmatpush.msrb.mxu3 %v447_v37  ;;  %v406_v37 = vadd.s32 %v1120_v40, %v389_v28  ;;  %vm429_vm13 = vcmp.lt.s32.totalorder %v413_v41, 200 }
  0x3f   : > { %702 = vmatmul.msk.f32.gmra.mxu0 %vm266_vm0, %v244_v12  ;;  %712 = vmatmul.msk.f32.gmra.mxu3 %vm266_vm0, %v254_v21 }
  0x40   : > { %vm422_vm12 = vcmp.lt.s32.totalorder %v406_v37, 200 }
  0x47   : > { %703 = vmatmul.msk.f32.gmra.mxu0 %vm266_vm0, %v245_v14  ;;  %713 = vmatmul.msk.f32.gmra.mxu3 %vm266_vm0, %v255_v27  ;;  %v404_v14 = vadd.s32 %v1120_v40, %v387_v6 }
  0x49   : > { %vm420_vm8 = vcmp.lt.s32.totalorder %v404_v14, 200 }
  0x4f   : > { %704 = vmatmul.msk.f32.gmra.mxu0 %vm266_vm0, %v246_v19 }
  0x57   : > { %705 = vmatmul.msk.f32.gmra.mxu0 %vm266_vm0, %v247_v25  ;;  %v395_v25 = vadd.s32 104, %v1118_v39 }
  0x5f   : > { %706 = vmatmul.msk.f32.gmra.mxu0 %vm266_vm0, %v248_v31  ;;  %v412_v31 = vadd.s32 %v1120_v40, %v395_v25 }
  0x61   : > { %vm428_vm11 = vcmp.lt.s32.totalorder %v412_v31, 200 }
  0x67   : > { %707 = vmatmul.msk.f32.gmra.mxu0 %vm266_vm0, %v249_v35 }
  0x9c   : > { %v332_v43 = vpop.f32.mrf.mxu0 }
  0x9d   : > { %v333_v45 = vadd.f32 %v1127_v42, %v332_v43 }
  0x9f   : > { %715 = vmatmul.msk.f32.vlgmr.msra.gmra.mxu1 %vm415_vm1, %v333_v45  ;;  %v431_v50 = vsel %vm415_vm1, %v333_v45, 0.0 }
  0xa2   : > { %v362_v60 = vpop.f32.mrf.mxu3 }
  0xa3   : > { %v1151_v4 = vadd.f32 %v1127_v42, %v362_v60 }
  0xa4   : > { %v335_v47 = vpop.f32.mrf.mxu0 }
  0xa5   : > { %v336_v49 = vadd.f32 %v1127_v42, %v335_v47  ;;  %v441_v12 = vsel %vm425_vm6, %v1151_v4, 0.0 }
  0xa7   : > { %v432_v51 = vsel %vm416_vm2, %v336_v49, 0.0  ;;  %716 = vmatmul.msk.f32.gmra.mxu1 %vm416_vm2, %v336_v49 }
  0xa8   : > { %v740_v52 = vpack.c.bf16 %v432_v51, %v431_v50  ;;  %v407_v51 = vadd.s32 %v1120_v40, %v390_v44 }
  0xaa   : > { %741 = vst [vmem:[%s1138_s23] sm:$0xff] %v740_v52   ;;  %v365_v7 = vpop.f32.mrf.mxu3  ;;  %v397_v52 = vadd.s32 120, %v1118_v39  ;;  %vm423_vm14 = vcmp.lt.s32.totalorder %v407_v51, 200 }
  0xab   : > { %v1162_v11 = vadd.f32 %v1127_v42, %v365_v7 }
  0xac   : > { %v338_v54 = vpop.f32.mrf.mxu0 }
  0xad   : > { %v339_v56 = vadd.f32 %v1127_v42, %v338_v54  ;;  %v442_v13 = vsel %vm426_vm7, %v1162_v11, 0.0  ;;  %v391_v54 = vadd.s32 72, %v1118_v39 }
  0xae   : > { %v765_v15 = vpack.c.bf16 %v442_v13, %v441_v12 }
  0xaf   : > { %717 = vmatmul.msk.f32.gmra.mxu1 %vm417_vm3, %v339_v56  ;;  %v433_v62 = vsel %vm417_vm3, %v339_v56, 0.0  ;;  %v414_v56 = vadd.s32 %v1120_v40, %v397_v52 }
  0xb0   : > { %781 = vst [vmem:[%s1138_s23 + $0x28] sm:$0xff] %v765_v15  }
  0xb1   : > { %vm430_vm15 = vcmp.lt.s32.totalorder %v414_v56, 200 }
  0xb2   : > { %v368_v18 = vpop.f32.mrf.mxu3 }
  0xb3   : > { %v369_v26 = vadd.f32 %v1127_v42, %v368_v18 }
  0xb4   : > { %v341_v58 = vpop.f32.mrf.mxu0 }
  0xb5   : > { %v342_v61 = vadd.f32 %v1127_v42, %v341_v58  ;;  %v443_v35 = vsel %vm427_vm10, %v369_v26, 0.0 }
  0xb7   : > { %v434_v63 = vsel %vm418_vm4, %v342_v61, 0.0  ;;  %718 = vmatmul.msk.f32.gmra.mxu1 %vm418_vm4, %v342_v61  ;;  %v408_v61 = vadd.s32 %v1120_v40, %v391_v54 }
  0xb8   : > { %v745_v0 = vpack.c.bf16 %v434_v63, %v433_v62 }
  0xb9   : > { %vm424_vm0 = vcmp.lt.s32.totalorder %v408_v61, 200 }
  0xba   : > { %777 = vst [vmem:[%s1138_s23 + $0x8] sm:$0xff] %v745_v0   ;;  %v371_v29 = vpop.f32.mrf.mxu3 }
  0xbb   : > { %v372_v33 = vadd.f32 %v1127_v42, %v371_v29 }
  0xbc   : > { %v344_v5 = vpop.f32.mrf.mxu0 }
  0xbd   : > { %v345_v10 = vadd.f32 %v1127_v42, %v344_v5  ;;  %v444_v36 = vsel %vm428_vm11, %v372_v33, 0.0 }
  0xbe   : > { %v770_v38 = vpack.c.bf16 %v444_v36, %v443_v35 }
  0xbf   : > { %719 = vmatmul.msk.f32.gmra.mxu1 %vm419_vm5, %v345_v10  ;;  %v435_v20 = vsel %vm419_vm5, %v345_v10, 0.0 }
  0xc0   : > { %782 = vst [vmem:[%s1138_s23 + $0x30] sm:$0xff] %v770_v38  }
  0xc2   : > { %v374_v45 = vpop.f32.mrf.mxu3 }
  0xc3   : > { %v375_v47 = vadd.f32 %v1127_v42, %v374_v45 }
  0xc4   : > { %v347_v16 = vpop.f32.mrf.mxu0 }
  0xc5   : > { %v348_v19 = vadd.f32 %v1127_v42, %v347_v16  ;;  %729 = vmatmul.msk.f32.vlgmr.msrb.gmra.mxu3 %vm429_vm13, %v375_v47  ;;  %v445_v58 = vsel %vm429_vm13, %v375_v47, 0.0 }
  0xc7   : > { %v436_v21 = vsel %vm420_vm8, %v348_v19, 0.0  ;;  %720 = vmatmul.msk.f32.gmra.mxu1 %vm420_vm8, %v348_v19 }
  0xc8   : > { %v750_v22 = vpack.c.bf16 %v436_v21, %v435_v20 }
  0xca   : > { %778 = vst [vmem:[%s1138_s23 + $0x10] sm:$0xff] %v750_v22   ;;  %v377_v55 = vpop.f32.mrf.mxu3 }
  0xcb   : > { %v378_v59 = vadd.f32 %v1127_v42, %v377_v55 }
  0xcc   : > { %v350_v27 = vpop.f32.mrf.mxu0 }
  0xcd   : > { %v351_v32 = vadd.f32 %v1127_v42, %v350_v27  ;;  %v446_v60 = vsel %vm430_vm15, %v378_v59, 0.0  ;;  %730 = vmatmul.msk.f32.gmra.mxu3 %vm430_vm15, %v378_v59 }
  0xce   : > { %v775_v62 = vpack.c.bf16 %v446_v60, %v445_v58 }
  0xcf   : > { %721 = vmatmul.msk.f32.gmra.mxu1 %vm421_vm9, %v351_v32  ;;  %v437_v48 = vsel %vm421_vm9, %v351_v32, 0.0 }
  0xd0   : > { %783 = vst [vmem:[%s1138_s23 + $0x38] sm:$0xff] %v775_v62  }
  0xd4   : > { %v353_v43 = vpop.f32.mrf.mxu0 }
  0xd5   : > { %v354_v46 = vadd.f32 %v1127_v42, %v353_v43 }
  0xd7   : > { %v438_v49 = vsel %vm422_vm12, %v354_v46, 0.0  ;;  %722 = vmatmul.msk.f32.vlgmr.msra.gmra.mxu2 %vm422_vm12, %v354_v46 }
  0xd8   : > { %v755_v50 = vpack.c.bf16 %v438_v49, %v437_v48 }
  0xda   : > { %779 = vst [vmem:[%s1138_s23 + $0x18] sm:$0xff] %v755_v50  }
  0xdc   : > { %v356_v53 = vpop.f32.mrf.mxu0 }
  0xdd   : > { %v357_v57 = vadd.f32 %v1127_v42, %v356_v53 }
  0xdf   : > { %723 = vmatmul.msk.f32.gmra.mxu2 %vm423_vm14, %v357_v57  ;;  %v439_v0 = vsel %vm423_vm14, %v357_v57, 0.0 }
  0xe4   : > { %v359_v39 = vpop.f32.mrf.mxu0 }
  0xe5   : > { %v360_v63 = vadd.f32 %v1127_v42, %v359_v39 }
  0xe7   : > { %v440_v1 = vsel %vm424_vm0, %v360_v63, 0.0  ;;  %724 = vmatmul.msk.f32.gmra.mxu2 %vm424_vm0, %v360_v63 }
  0xe8   : > { %v760_v2 = vpack.c.bf16 %v440_v1, %v439_v0 }
  0xea   : > { %780 = vst [vmem:[%s1138_s23 + $0x20] sm:$0xff] %v760_v2  }
  0xef   : > { %725 = vmatmul.msk.f32.gmra.mxu2 %vm425_vm6, %v1151_v4 }
  0xf7   : > { %726 = vmatmul.msk.f32.gmra.mxu2 %vm426_vm7, %v1162_v11 }
  0xff   : > { %727 = vmatmul.msk.f32.gmra.mxu2 %vm427_vm10, %v369_v26 }
 0x107   : > { %728 = vmatmul.msk.f32.gmra.mxu2 %vm428_vm11, %v372_v33 }
 0x108   : > { %891 = shalt.err (!%p888_p3)
}
 0x109   : > { %s928_s16 = smov 64   ;;  %s929_s23 = smov 4   ;;  %vm528_vm1 = vcmask 15360  }
 0x10a   : > { %822 = dma.vmem_to_hbm [thread:$0]  (%p998_p5), %s596_s8, 1024, %s598_s10, %s578_s11, %s928_s16, %s928_s16, %s929_s23  }
 0x10b   : > { %s1244_s7 = scalar_lea.vmem %s1300_s5, %s695_s14 }
 0x11c   : > { %v480_v40 = vpop.f32.mrf.mxu1 }
 0x11d   : > { %529 = vst.msk [vmem:[%s1244_s7] sm:$0xff] %vm528_vm1, %v480_v40 }
 0x124   : > { %v483_v42 = vpop.f32.mrf.mxu1 }
 0x125   : > { %530 = vst.msk [vmem:[%s1244_s7 + $0x8] sm:$0xff] %vm528_vm1, %v483_v42 }
 0x12c   : > { %v486_v3 = vpop.f32.mrf.mxu1 }
 0x12d   : > { %531 = vst.msk [vmem:[%s1244_s7 + $0x10] sm:$0xff] %vm528_vm1, %v486_v3 }
 0x134   : > { %v489_v4 = vpop.f32.mrf.mxu1 }
 0x135   : > { %532 = vst.msk [vmem:[%s1244_s7 + $0x18] sm:$0xff] %vm528_vm1, %v489_v4 }
 0x13c   : > { %v492_v5 = vpop.f32.mrf.mxu1 }
 0x13d   : > { %533 = vst.msk [vmem:[%s1244_s7 + $0x20] sm:$0xff] %vm528_vm1, %v492_v5 }
 0x144   : > { %v495_v6 = vpop.f32.mrf.mxu1 }
 0x145   : > { %534 = vst.msk [vmem:[%s1244_s7 + $0x28] sm:$0xff] %vm528_vm1, %v495_v6 }
 0x148   : > { %v522_v10 = vpop.f32.mrf.mxu3 }
 0x149   : > { %543 = vst.msk [vmem:[%s1244_s7 + $0x70] sm:$0xff] %vm528_vm1, %v522_v10 }
 0x14c   : > { %v498_v7 = vpop.f32.mrf.mxu1 }
 0x14d   : > { %535 = vst.msk [vmem:[%s1244_s7 + $0x30] sm:$0xff] %vm528_vm1, %v498_v7 }
 0x150   : > { %v525_v12 = vpop.f32.mrf.mxu3 }
 0x151   : > { %544 = vst.msk [vmem:[%s1244_s7 + $0x78] sm:$0xff] %vm528_vm1, %v525_v12 }
 0x15a   : > { %v501_v8 = vpop.f32.mrf.mxu2 }
 0x15b   : > { %536 = vst.msk [vmem:[%s1244_s7 + $0x38] sm:$0xff] %vm528_vm1, %v501_v8 }
 0x162   : > { %v504_v9 = vpop.f32.mrf.mxu2 }
 0x163   : > { %537 = vst.msk [vmem:[%s1244_s7 + $0x40] sm:$0xff] %vm528_vm1, %v504_v9 }
 0x16a   : > { %v507_v11 = vpop.f32.mrf.mxu2 }
 0x16b   : > { %538 = vst.msk [vmem:[%s1244_s7 + $0x48] sm:$0xff] %vm528_vm1, %v507_v11 }
 0x172   : > { %v510_v13 = vpop.f32.mrf.mxu2 }
 0x173   : > { %539 = vst.msk [vmem:[%s1244_s7 + $0x50] sm:$0xff] %vm528_vm1, %v510_v13 }
 0x17a   : > { %v513_v14 = vpop.f32.mrf.mxu2 }
 0x17b   : > { %540 = vst.msk [vmem:[%s1244_s7 + $0x58] sm:$0xff] %vm528_vm1, %v513_v14 }
 0x182   : > { %v516_v15 = vpop.f32.mrf.mxu2 }
 0x183   : > { %541 = vst.msk [vmem:[%s1244_s7 + $0x60] sm:$0xff] %vm528_vm1, %v516_v15 }
 0x18a   : > { %v519_v16 = vpop.f32.mrf.mxu2 }
 0x18b   : > { %542 = vst.msk [vmem:[%s1244_s7 + $0x68] sm:$0xff] %vm528_vm1, %v519_v16 }
 0x18c PF: > { %p828_p4 = scmp.ge.s32.totalorder %s926_s21, 2  ;;  %s616_s28 = sand.u32 1, %s914_s18  }
 0x18d   : > { %s617_s9 = scalar_lea.sflag [#allocation3], %s616_s28 }
 0x18e   : > { %p825_p5 = pnand %p828_p4, %p1002_p6 }
 0x190   : > { %p826_p7 = pneg %p825_p5 }
 0x192   : > { %909 = dma.done.wait (%p826_p7), %s617_s9, 1024  }
 0x193   : > { %911 = vsyncadd (%p826_p7), %s617_s9, 4294966272  ;;  %p16_p8 = scmp.ge.s32.totalorder %s985_s24, 4   ;;  %s1303_s18 = smov %s918_s19 }
 0x194   : > { %s1304_s19 = smov %s922_s20  ;;  %s1305_s20 = smov %s996_s27 }
 0x195   : > { %s1306_s21 = smov %s985_s24  ;;  %18 = sbr.rel (!%p16_p8) target bundleno = 3 (0x3), region = 83 }
 0x19a   :  { %631 = vsyncpa [#allocation3], 1 }
 0x19b   :  { %633 = vsyncpa [#allocation3 + $0x1], 1 }

</bundles_post_ra>
